<compile_context>
chip_gen: v7x
topology: tpu7x:2x2x1
jax: 0.10.0
libtpu: 0.0.40
codegen_flags: <defaults>
</compile_context>

<pallas_src>
import functools
import math

import jax
import jax.numpy as jnp
from jax.experimental import pallas as pl
from jax.experimental.pallas import tpu as pltpu

_LANES = 128


def _num_tensorcores_per_chip():
    """2 on dual-TensorCore v7x, else 1 (v5e / v6e)."""
    try:
        kind = jax.devices()[0].device_kind.lower()
    except Exception:  # pragma: no cover - no devices / non-TPU backend
        return 1
    return 2 if "v7" in kind else 1


def _dqn_mlp_kernel(x_ref, p_ref, q_ref, *act_refs,
                    n_states, padded_width, n_actions):
    """Fused  relu(x @ W1 + b1) @ W2 + b2  from one packed parameter slab.

    x_ref:    (TB, S)      activations for this batch tile
    p_ref:    (W+S+2, W)   packed params (W = lane-padded width >= 128):
                rows [0, W)       : W2 zero-padded to (W, W)  (tile-aligned)
                row   W           : b2 in lanes [0, A)
                rows [W+1, W+1+S) : W1 (S, H) in lanes [0, H), zero-padded
                row   W+1+S       : b1 in lanes [0, H)
    q_ref:    (TB, A)      Q-values (f32)
    act_refs: optionally ((TB, 1) int32,) fused greedy action for act().
    """
    S, W, A = n_states, padded_width, n_actions
    f32 = jnp.float32
    x = x_ref[...].astype(f32)                                        # (TB, S)

    # --- layer 1 on the VPU: K = S (=4) would leave the MXU ~idle, so unroll
    # it as S rank-1 multiply-adds. The b1 row seeds the accumulator; padded
    # lanes stay 0, so relu(0) = 0 there.
    w1_row0, b1_row = W + 1, W + 1 + S
    acc = (x[:, 0:1] * p_ref[w1_row0:w1_row0 + 1, :].astype(f32)
           + p_ref[b1_row:b1_row + 1, :].astype(f32))
    for k in range(1, S):
        acc = acc + x[:, k:k + 1] * p_ref[w1_row0 + k:w1_row0 + k + 1, :].astype(f32)
    h = jnp.maximum(acc, 0.0)                                         # (TB, W)

    # --- layer 2 on the MXU against the full zero-padded (W, W) W2 tile (rows
    # >= H are zero and contribute nothing): no lane-slice / relayout of `h`.
    w2 = p_ref[0:W, :].astype(f32)                                    # (W, W), aligned view
    b2 = p_ref[W:W + 1, :].astype(f32)                                # (1, W)
    # TPU-default f32 matmul precision matches the pure-JAX reference; pass
    # precision=jax.lax.Precision.HIGHEST for bit-closer parity with CPU f32.
    q = jnp.dot(h, w2, preferred_element_type=f32) + b2               # (TB, W)

    q_ref[...] = q[:, 0:A].astype(q_ref.dtype)

    if act_refs:  # fused act() consumer: greedy argmax over the valid lanes
        (act_ref,) = act_refs
        lane = jax.lax.broadcasted_iota(jnp.int32, q.shape, 1)
        valid = lane < A
        qm = jnp.where(valid, q, -jnp.inf)
        mx = jnp.max(qm, axis=-1, keepdims=True)
        first = jnp.where((qm == mx) & valid, lane.astype(f32), f32(1e9))
        act_ref[...] = jnp.min(first, axis=-1, keepdims=True).astype(jnp.int32)
    # TODO(synk): learn()-step fusion (Q[b, a_b] gather + target-net max_a Q')
    # would take the action indices via scalar prefetch and a second slab.


def pack_params(w1, b1, w2, b2, dtype=jnp.float32):
    """Pack (W1, b1, W2, b2) into one lane-padded slab. Call once at init.

    Layout (rows): [W2 zero-padded to (W, W) | b2 | W1 (S rows) | b1].
    Use dtype=jnp.bfloat16 on v6e / v7x to halve the parameter DMA; keep f32
    on v5e (no bf16 VPU).  Compute stays f32 inside the kernel either way.
    """
    S, H = w1.shape
    H2, A = w2.shape
    assert H2 == H
    W = max(_LANES, -(-max(H, A) // _LANES) * _LANES)
    w2p = jnp.pad(w2, ((0, W - H), (0, W - A)))                        # (W, W)
    b2p = jnp.pad(jnp.reshape(b2, (1, A)), ((0, 0), (0, W - A)))       # (1, W)
    w1p = jnp.pad(w1, ((0, 0), (0, W - H)))                            # (S, W)
    b1p = jnp.pad(jnp.reshape(b1, (1, H)), ((0, 0), (0, W - H)))       # (1, W)
    return jnp.concatenate([w2p, b2p, w1p, b1p], axis=0).astype(dtype)  # (W+S+2, W)


def net_forward(x, packed_params, *, n_hidden, n_actions, return_action=False):
    """Forward pass of Net: relu(x @ W1 + b1) @ W2 + b2 -> (B, n_actions).

    If return_action=True, additionally returns the in-kernel greedy action
    (B,) int32 (fused act() consumer) from the same pallas_call.
    """
    B, S = x.shape
    R, W = packed_params.shape
    assert R == W + S + 2, "packed_params must come from pack_params()"
    assert n_hidden <= W and n_actions <= W

    # Generation-aware batch tiling: the kernel is per-grid-step-overhead bound
    # (~0.35us / step) and its tiles are tiny, so use one whole-batch step on
    # single-TC chips (v5e/v6e) and exactly one "parallel" block per TensorCore
    # on dual-TC v7x.  Small act-step batches always use a single step.
    if _num_tensorcores_per_chip() >= 2 and B >= 256 and B % 16 == 0:
        tb = B // 2
    else:
        tb = B
    grid = (B // tb,)

    kernel = functools.partial(
        _dqn_mlp_kernel, n_states=S, padded_width=W, n_actions=n_actions)

    q_shape = jax.ShapeDtypeStruct((B, n_actions), jnp.float32)
    q_spec = pl.BlockSpec((tb, n_actions), lambda i: (i, 0))
    if return_action:
        out_shape = (q_shape, jax.ShapeDtypeStruct((B, 1), jnp.int32))
        out_specs = (q_spec, pl.BlockSpec((tb, 1), lambda i: (i, 0)))
    else:
        out_shape = q_shape
        out_specs = q_spec

    def call(single_buffer_params):
        # Constant index_map -> the slab is fetched once; a second (double)
        # buffer for it would be dead VMEM, so request single buffering.
        param_kwargs = {"pipeline_mode": pl.Buffered(1)} if single_buffer_params else {}
        return pl.pallas_call(
            kernel,
            out_shape=out_shape,
            grid=grid,
            in_specs=[
                pl.BlockSpec((tb, S), lambda i: (i, 0)),                  # batch tile of x
                pl.BlockSpec((R, W), lambda i: (0, 0), **param_kwargs),   # whole param slab
            ],
            out_specs=out_specs,
            compiler_params=pltpu.CompilerParams(
                dimension_semantics=("parallel",)),
        )(x, packed_params)

    try:
        result = call(True)
    except Exception:  # pragma: no cover - jax builds without pipeline_mode support
        result = call(False)

    if return_action:
        q, act = result
        return q, act[:, 0]
    return result


def greedy_action(x, packed_params, *, n_hidden, n_actions):
    """Fused DQN act() step: argmax_a Q(x, a), computed inside the kernel."""
    _, act = net_forward(x, packed_params, n_hidden=n_hidden,
                         n_actions=n_actions, return_action=True)
    return act


def init_params(key, n_states, n_hidden, n_actions):
    """Mirrors the PyTorch module: xavier_normal_ weights, default uniform
    Linear bias init. Weights stored as (in, out), i.e. nn.Linear.weight.T."""
    k1, k2, k3, k4 = jax.random.split(key, 4)

    def xavier_normal(k, fan_in, fan_out):
        std = math.sqrt(2.0 / (fan_in + fan_out))
        return std * jax.random.normal(k, (fan_in, fan_out), dtype=jnp.float32)

    def bias_init(k, fan_in, fan_out):
        bound = 1.0 / math.sqrt(fan_in)
        return jax.random.uniform(
            k, (1, fan_out), minval=-bound, maxval=bound, dtype=jnp.float32)

    w1 = xavier_normal(k1, n_states, n_hidden)
    b1 = bias_init(k2, n_states, n_hidden)
    w2 = xavier_normal(k3, n_hidden, n_actions)
    b2 = bias_init(k4, n_hidden, n_actions)
    return w1, b1, w2, b2


if __name__ == "__main__":
    # CartPole-v0: n_states = 4, n_actions = 2. n_hidden comes from a JSON
    # config in the original code; use a deterministic synthetic value here.
    n_states, n_hidden, n_actions = 4, 32, 2

    key = jax.random.PRNGKey(0)
    k_x, k_p, k_xl = jax.random.split(key, 3)

    w1, b1, w2, b2 = init_params(k_p, n_states, n_hidden, n_actions)
    packed_f32 = pack_params(w1, b1, w2, b2)                        # once, outside the hot loop
    packed_bf16 = pack_params(w1, b1, w2, b2, dtype=jnp.bfloat16)   # v6e / v7x option

    def ref_forward(xx, a1, c1, a2, c2):
        h = jnp.maximum(xx @ a1 + jnp.reshape(c1, (1, -1)), 0.0)
        return h @ a2 + jnp.reshape(c2, (1, -1))

    # --- act-step sized batch (grid = 1 everywhere), with fused argmax ---
    x_small = jax.random.normal(k_x, (8, n_states), dtype=jnp.float32)
    q_small, a_small = net_forward(x_small, packed_f32, n_hidden=n_hidden,
                                   n_actions=n_actions, return_action=True)
    q_small = jax.block_until_ready(q_small)
    assert q_small.shape == (8, n_actions)
    assert jnp.allclose(q_small, ref_forward(x_small, w1, b1, w2, b2),
                        atol=1e-4, rtol=1e-4)
    assert jnp.array_equal(a_small, jnp.argmax(q_small, axis=1))

    # --- replay-step sized batch (grid = 1 on v5e/v6e, 2 blocks on v7x) ---
    x_large = jax.random.normal(k_xl, (256, n_states), dtype=jnp.float32)
    q_large = net_forward(x_large, packed_f32, n_hidden=n_hidden, n_actions=n_actions)
    q_large = jax.block_until_ready(q_large)
    assert q_large.shape == (256, n_actions)
    assert jnp.allclose(q_large, ref_forward(x_large, w1, b1, w2, b2),
                        atol=1e-4, rtol=1e-4)

    # --- bf16 parameter slab (halves param DMA; recommended on v6e / v7x) ---
    q_bf16 = net_forward(x_large, packed_bf16, n_hidden=n_hidden, n_actions=n_actions)
    q_bf16 = jax.block_until_ready(q_bf16)
    wb = lambda t: t.astype(jnp.bfloat16).astype(jnp.float32)
    assert jnp.allclose(q_bf16, ref_forward(x_large, wb(w1), wb(b1), wb(w2), wb(b2)),
                        atol=2e-2, rtol=2e-2)

    print("KERNEL_OK")
</pallas_src>

<mosaic_0001>
module attributes {stable_mosaic.version = 11 : i64} {
  func.func @_dqn_mlp_kernel(%arg0: i32, %arg1: memref<8x4xf32, #tpu.memory_space<vmem>>, %arg2: memref<134x128xf32, #tpu.memory_space<vmem>>, %arg3: memref<8x2xf32, #tpu.memory_space<vmem>>, %arg4: memref<8x1xi32, #tpu.memory_space<vmem>>) attributes {dimension_semantics = [#tpu.dimension_semantics<parallel>], iteration_bounds = array<i64: 1>, scalar_prefetch = 0 : i64, scratch_operands = 0 : i64, tpu.core_type = #tpu.core_type<tc>, window_params = [{transform_indices = @transform_0, window_bounds = array<i64: 8, 4>}, {pipeline_mode = #tpu.pipeline_mode<synchronous>, transform_indices = @transform_1, window_bounds = array<i64: 134, 128>}, {transform_indices = @transform_2, window_bounds = array<i64: 8, 2>}, {transform_indices = @transform_3, window_bounds = array<i64: 8, 1>}]} {
    %c0 = arith.constant 0 : index
    %c0_0 = arith.constant 0 : index
    %0 = vector.load %arg1[%c0, %c0_0] : memref<8x4xf32, #tpu.memory_space<vmem>>, vector<8x4xf32>
    %1 = vector.extract_strided_slice %0 {offsets = [0, 0], sizes = [8, 1], strides = [1, 1]} : vector<8x4xf32> to vector<8x1xf32>
    %c129 = arith.constant 129 : index
    %c0_1 = arith.constant 0 : index
    %2 = vector.load %arg2[%c129, %c0_1] : memref<134x128xf32, #tpu.memory_space<vmem>>, vector<1x128xf32>
    %3 = vector.broadcast %1 : vector<8x1xf32> to vector<8x128xf32>
    %4 = vector.broadcast %2 : vector<1x128xf32> to vector<8x128xf32>
    %5 = arith.mulf %3, %4 : vector<8x128xf32>
    %c133 = arith.constant 133 : index
    %c0_2 = arith.constant 0 : index
    %6 = vector.load %arg2[%c133, %c0_2] : memref<134x128xf32, #tpu.memory_space<vmem>>, vector<1x128xf32>
    %7 = vector.broadcast %6 : vector<1x128xf32> to vector<8x128xf32>
    %8 = arith.addf %5, %7 : vector<8x128xf32>
    %9 = vector.extract_strided_slice %0 {offsets = [0, 1], sizes = [8, 1], strides = [1, 1]} : vector<8x4xf32> to vector<8x1xf32>
    %c130 = arith.constant 130 : index
    %c0_3 = arith.constant 0 : index
    %10 = vector.load %arg2[%c130, %c0_3] : memref<134x128xf32, #tpu.memory_space<vmem>>, vector<1x128xf32>
    %11 = vector.broadcast %9 : vector<8x1xf32> to vector<8x128xf32>
    %12 = vector.broadcast %10 : vector<1x128xf32> to vector<8x128xf32>
    %13 = arith.mulf %11, %12 : vector<8x128xf32>
    %14 = arith.addf %8, %13 : vector<8x128xf32>
    %15 = vector.extract_strided_slice %0 {offsets = [0, 2], sizes = [8, 1], strides = [1, 1]} : vector<8x4xf32> to vector<8x1xf32>
    %c131 = arith.constant 131 : index
    %c0_4 = arith.constant 0 : index
    %16 = vector.load %arg2[%c131, %c0_4] : memref<134x128xf32, #tpu.memory_space<vmem>>, vector<1x128xf32>
    %17 = vector.broadcast %15 : vector<8x1xf32> to vector<8x128xf32>
    %18 = vector.broadcast %16 : vector<1x128xf32> to vector<8x128xf32>
    %19 = arith.mulf %17, %18 : vector<8x128xf32>
    %20 = arith.addf %14, %19 : vector<8x128xf32>
    %21 = vector.extract_strided_slice %0 {offsets = [0, 3], sizes = [8, 1], strides = [1, 1]} : vector<8x4xf32> to vector<8x1xf32>
    %c132 = arith.constant 132 : index
    %c0_5 = arith.constant 0 : index
    %22 = vector.load %arg2[%c132, %c0_5] : memref<134x128xf32, #tpu.memory_space<vmem>>, vector<1x128xf32>
    %23 = vector.broadcast %21 : vector<8x1xf32> to vector<8x128xf32>
    %24 = vector.broadcast %22 : vector<1x128xf32> to vector<8x128xf32>
    %25 = arith.mulf %23, %24 : vector<8x128xf32>
    %26 = arith.addf %20, %25 : vector<8x128xf32>
    %cst = arith.constant 0.000000e+00 : f32
    %27 = vector.broadcast %cst : f32 to vector<8x128xf32>
    %28 = arith.maximumf %26, %27 : vector<8x128xf32>
    %c0_6 = arith.constant 0 : index
    %c0_7 = arith.constant 0 : index
    %29 = vector.load %arg2[%c0_6, %c0_7] : memref<134x128xf32, #tpu.memory_space<vmem>>, vector<128x128xf32>
    %c128 = arith.constant 128 : index
    %c0_8 = arith.constant 0 : index
    %30 = vector.load %arg2[%c128, %c0_8] : memref<134x128xf32, #tpu.memory_space<vmem>>, vector<1x128xf32>
    %cst_9 = arith.constant dense<0.000000e+00> : vector<8x128xf32>
    %31 = tpu.matmul %28, %29, %cst_9 {dimension_numbers = #tpu.dot_dimension_numbers<[1], [0], [0], [1], [0, 0, 1, 1], [], []>} : vector<8x128xf32>, vector<128x128xf32>, vector<8x128xf32> -> vector<8x128xf32>
    %32 = vector.broadcast %30 : vector<1x128xf32> to vector<8x128xf32>
    %33 = arith.addf %31, %32 : vector<8x128xf32>
    %34 = vector.extract_strided_slice %33 {offsets = [0, 0], sizes = [8, 2], strides = [1, 1]} : vector<8x128xf32> to vector<8x2xf32>
    %c0_10 = arith.constant 0 : index
    %c0_11 = arith.constant 0 : index
    %35 = vector.load %arg3[%c0_10, %c0_11] : memref<8x2xf32, #tpu.memory_space<vmem>>, vector<8x2xf32>
    tpu.vector_store %arg3[%c0_10, %c0_11], %34 {strides = array<i32>} : memref<8x2xf32, #tpu.memory_space<vmem>>, vector<8x2xf32>,
    %36 = tpu.iota {dimensions = array<i32: 1>} : vector<8x128xi32>
    %c2_i32 = arith.constant 2 : i32
    %37 = vector.broadcast %c2_i32 : i32 to vector<8x128xi32>
    %38 = arith.cmpi slt, %36, %37 : vector<8x128xi32>
    %cst_12 = arith.constant 0xFF800000 : f32
    %39 = vector.broadcast %cst_12 : f32 to vector<8x128xf32>
    %40 = arith.select %38, %33, %39 : vector<8x128xi1>, vector<8x128xf32>
    %cst_13 = arith.constant dense<0xFF800000> : vector<8xf32>
    %41 = vector.multi_reduction <maximumf>, %40, %cst_13 [1] : vector<8x128xf32> to vector<8xf32>
    %42 = vector.shape_cast %41 : vector<8xf32> to vector<8x1xf32>
    %43 = vector.broadcast %42 : vector<8x1xf32> to vector<8x128xf32>
    %44 = arith.cmpf oeq, %40, %43 : vector<8x128xf32>
    %45 = arith.andi %44, %38 : vector<8x128xi1>
    %46 = arith.sitofp %36 : vector<8x128xi32> to vector<8x128xf32>
    %cst_14 = arith.constant 1.000000e+09 : f32
    %47 = vector.broadcast %cst_14 : f32 to vector<8x128xf32>
    %48 = arith.select %45, %46, %47 : vector<8x128xi1>, vector<8x128xf32>
    %cst_15 = arith.constant dense<0x7F800000> : vector<8xf32>
    %49 = vector.multi_reduction <minimumf>, %48, %cst_15 [1] : vector<8x128xf32> to vector<8xf32>
    %50 = vector.shape_cast %49 : vector<8xf32> to vector<8x1xf32>
    %51 = arith.fptosi %50 : vector<8x1xf32> to vector<8x1xi32>
    %c0_16 = arith.constant 0 : index
    %c0_17 = arith.constant 0 : index
    %52 = vector.load %arg4[%c0_16, %c0_17] : memref<8x1xi32, #tpu.memory_space<vmem>>, vector<8x1xi32>
    tpu.vector_store %arg4[%c0_16, %c0_17], %51 {strides = array<i32>} : memref<8x1xi32, #tpu.memory_space<vmem>>, vector<8x1xi32>,
    return
  }
  func.func @transform_0(%arg0: i32) -> (i32, i32) {
    %c0_i32 = arith.constant 0 : i32
    %c0_i32_0 = arith.constant 0 : i32
    return %arg0, %c0_i32 : i32, i32
  }
  func.func @transform_1(%arg0: i32) -> (i32, i32) {
    %c0_i32 = arith.constant 0 : i32
    %c0_i32_0 = arith.constant 0 : i32
    %c0_i32_1 = arith.constant 0 : i32
    return %c0_i32, %c0_i32_0 : i32, i32
  }
  func.func @transform_2(%arg0: i32) -> (i32, i32) {
    %c0_i32 = arith.constant 0 : i32
    %c0_i32_0 = arith.constant 0 : i32
    return %arg0, %c0_i32 : i32, i32
  }
  func.func @transform_3(%arg0: i32) -> (i32, i32) {
    %c0_i32 = arith.constant 0 : i32
    %c0_i32_0 = arith.constant 0 : i32
    return %arg0, %c0_i32 : i32, i32
  }
}

module attributes {stable_mosaic.version = 11 : i64} {
  func.func @_dqn_mlp_kernel(%arg0: i32, %arg1: memref<8x4xf32, #tpu.memory_space<vmem>>, %arg2: memref<134x128xf32, #tpu.memory_space<vmem>>, %arg3: memref<8x2xf32, #tpu.memory_space<vmem>>, %arg4: memref<8x1xi32, #tpu.memory_space<vmem>>) attributes {dimension_semantics = [#tpu.dimension_semantics<parallel>], iteration_bounds = array<i64: 1>, scalar_prefetch = 0 : i64, scratch_operands = 0 : i64, tpu.core_type = #tpu.core_type<tc>, window_params = [{transform_indices = @transform_0, window_bounds = array<i64: 8, 4>}, {pipeline_mode = #tpu.pipeline_mode<synchronous>, transform_indices = @transform_1, window_bounds = array<i64: 134, 128>}, {transform_indices = @transform_2, window_bounds = array<i64: 8, 2>}, {transform_indices = @transform_3, window_bounds = array<i64: 8, 1>}]} {
    %c0 = arith.constant 0 : index
    %c0_0 = arith.constant 0 : index
    %0 = vector.load %arg1[%c0, %c0_0] : memref<8x4xf32, #tpu.memory_space<vmem>>, vector<8x4xf32>
    %1 = vector.extract_strided_slice %0 {offsets = [0, 0], sizes = [8, 1], strides = [1, 1]} : vector<8x4xf32> to vector<8x1xf32>
    %c129 = arith.constant 129 : index
    %c0_1 = arith.constant 0 : index
    %2 = vector.load %arg2[%c129, %c0_1] : memref<134x128xf32, #tpu.memory_space<vmem>>, vector<1x128xf32>
    %3 = vector.broadcast %1 : vector<8x1xf32> to vector<8x128xf32>
    %4 = vector.broadcast %2 : vector<1x128xf32> to vector<8x128xf32>
    %5 = arith.mulf %3, %4 : vector<8x128xf32>
    %c133 = arith.constant 133 : index
    %c0_2 = arith.constant 0 : index
    %6 = vector.load %arg2[%c133, %c0_2] : memref<134x128xf32, #tpu.memory_space<vmem>>, vector<1x128xf32>
    %7 = vector.broadcast %6 : vector<1x128xf32> to vector<8x128xf32>
    %8 = arith.addf %5, %7 : vector<8x128xf32>
    %9 = vector.extract_strided_slice %0 {offsets = [0, 1], sizes = [8, 1], strides = [1, 1]} : vector<8x4xf32> to vector<8x1xf32>
    %c130 = arith.constant 130 : index
    %c0_3 = arith.constant 0 : index
    %10 = vector.load %arg2[%c130, %c0_3] : memref<134x128xf32, #tpu.memory_space<vmem>>, vector<1x128xf32>
    %11 = vector.broadcast %9 : vector<8x1xf32> to vector<8x128xf32>
    %12 = vector.broadcast %10 : vector<1x128xf32> to vector<8x128xf32>
    %13 = arith.mulf %11, %12 : vector<8x128xf32>
    %14 = arith.addf %8, %13 : vector<8x128xf32>
    %15 = vector.extract_strided_slice %0 {offsets = [0, 2], sizes = [8, 1], strides = [1, 1]} : vector<8x4xf32> to vector<8x1xf32>
    %c131 = arith.constant 131 : index
    %c0_4 = arith.constant 0 : index
    %16 = vector.load %arg2[%c131, %c0_4] : memref<134x128xf32, #tpu.memory_space<vmem>>, vector<1x128xf32>
    %17 = vector.broadcast %15 : vector<8x1xf32> to vector<8x128xf32>
    %18 = vector.broadcast %16 : vector<1x128xf32> to vector<8x128xf32>
    %19 = arith.mulf %17, %18 : vector<8x128xf32>
    %20 = arith.addf %14, %19 : vector<8x128xf32>
    %21 = vector.extract_strided_slice %0 {offsets = [0, 3], sizes = [8, 1], strides = [1, 1]} : vector<8x4xf32> to vector<8x1xf32>
    %c132 = arith.constant 132 : index
    %c0_5 = arith.constant 0 : index
    %22 = vector.load %arg2[%c132, %c0_5] : memref<134x128xf32, #tpu.memory_space<vmem>>, vector<1x128xf32>
    %23 = vector.broadcast %21 : vector<8x1xf32> to vector<8x128xf32>
    %24 = vector.broadcast %22 : vector<1x128xf32> to vector<8x128xf32>
    %25 = arith.mulf %23, %24 : vector<8x128xf32>
    %26 = arith.addf %20, %25 : vector<8x128xf32>
    %cst = arith.constant 0.000000e+00 : f32
    %27 = vector.broadcast %cst : f32 to vector<8x128xf32>
    %28 = arith.maximumf %26, %27 : vector<8x128xf32>
    %c0_6 = arith.constant 0 : index
    %c0_7 = arith.constant 0 : index
    %29 = vector.load %arg2[%c0_6, %c0_7] : memref<134x128xf32, #tpu.memory_space<vmem>>, vector<128x128xf32>
    %c128 = arith.constant 128 : index
    %c0_8 = arith.constant 0 : index
    %30 = vector.load %arg2[%c128, %c0_8] : memref<134x128xf32, #tpu.memory_space<vmem>>, vector<1x128xf32>
    %cst_9 = arith.constant dense<0.000000e+00> : vector<8x128xf32>
    %31 = tpu.matmul %28, %29, %cst_9 {dimension_numbers = #tpu.dot_dimension_numbers<[1], [0], [0], [1], [0, 0, 1, 1], [], []>} : vector<8x128xf32>, vector<128x128xf32>, vector<8x128xf32> -> vector<8x128xf32>
    %32 = vector.broadcast %30 : vector<1x128xf32> to vector<8x128xf32>
    %33 = arith.addf %31, %32 : vector<8x128xf32>
    %34 = vector.extract_strided_slice %33 {offsets = [0, 0], sizes = [8, 2], strides = [1, 1]} : vector<8x128xf32> to vector<8x2xf32>
    %c0_10 = arith.constant 0 : index
    %c0_11 = arith.constant 0 : index
    %35 = vector.load %arg3[%c0_10, %c0_11] : memref<8x2xf32, #tpu.memory_space<vmem>>, vector<8x2xf32>
    tpu.vector_store %arg3[%c0_10, %c0_11], %34 {strides = array<i32>} : memref<8x2xf32, #tpu.memory_space<vmem>>, vector<8x2xf32>,
    %36 = tpu.iota {dimensions = array<i32: 1>} : vector<8x128xi32>
    %c2_i32 = arith.constant 2 : i32
    %37 = vector.broadcast %c2_i32 : i32 to vector<8x128xi32>
    %38 = arith.cmpi slt, %36, %37 : vector<8x128xi32>
    %cst_12 = arith.constant 0xFF800000 : f32
    %39 = vector.broadcast %cst_12 : f32 to vector<8x128xf32>
    %40 = arith.select %38, %33, %39 : vector<8x128xi1>, vector<8x128xf32>
    %cst_13 = arith.constant dense<0xFF800000> : vector<8xf32>
    %41 = vector.multi_reduction <maximumf>, %40, %cst_13 [1] : vector<8x128xf32> to vector<8xf32>
    %42 = vector.shape_cast %41 : vector<8xf32> to vector<8x1xf32>
    %43 = vector.broadcast %42 : vector<8x1xf32> to vector<8x128xf32>
    %44 = arith.cmpf oeq, %40, %43 : vector<8x128xf32>
    %45 = arith.andi %44, %38 : vector<8x128xi1>
    %46 = arith.sitofp %36 : vector<8x128xi32> to vector<8x128xf32>
    %cst_14 = arith.constant 1.000000e+09 : f32
    %47 = vector.broadcast %cst_14 : f32 to vector<8x128xf32>
    %48 = arith.select %45, %46, %47 : vector<8x128xi1>, vector<8x128xf32>
    %cst_15 = arith.constant dense<0x7F800000> : vector<8xf32>
    %49 = vector.multi_reduction <minimumf>, %48, %cst_15 [1] : vector<8x128xf32> to vector<8xf32>
    %50 = vector.shape_cast %49 : vector<8xf32> to vector<8x1xf32>
    %51 = arith.fptosi %50 : vector<8x1xf32> to vector<8x1xi32>
    %c0_16 = arith.constant 0 : index
    %c0_17 = arith.constant 0 : index
    %52 = vector.load %arg4[%c0_16, %c0_17] : memref<8x1xi32, #tpu.memory_space<vmem>>, vector<8x1xi32>
    tpu.vector_store %arg4[%c0_16, %c0_17], %51 {strides = array<i32>} : memref<8x1xi32, #tpu.memory_space<vmem>>, vector<8x1xi32>,
    return
  }
  func.func @transform_0(%arg0: i32) -> (i32, i32) {
    %c0_i32 = arith.constant 0 : i32
    %c0_i32_0 = arith.constant 0 : i32
    return %arg0, %c0_i32 : i32, i32
  }
  func.func @transform_1(%arg0: i32) -> (i32, i32) {
    %c0_i32 = arith.constant 0 : i32
    %c0_i32_0 = arith.constant 0 : i32
    %c0_i32_1 = arith.constant 0 : i32
    return %c0_i32, %c0_i32_0 : i32, i32
  }
  func.func @transform_2(%arg0: i32) -> (i32, i32) {
    %c0_i32 = arith.constant 0 : i32
    %c0_i32_0 = arith.constant 0 : i32
    return %arg0, %c0_i32 : i32, i32
  }
  func.func @transform_3(%arg0: i32) -> (i32, i32) {
    %c0_i32 = arith.constant 0 : i32
    %c0_i32_0 = arith.constant 0 : i32
    return %arg0, %c0_i32 : i32, i32
  }
}

</mosaic_0001>

<bundles_post_ra>
// kernel: tpu_custom_call.1
= control target key start
LH: loop header
LB: loop body
LE: loop exit
PB: predicated region body
PF: predicated region fallthrough
CT: control target
= control target key end

     0   :  { %9 = vsyncpa [#allocation3], 0  ;;  %s319_s12 = smov [#allocation2]   ;;  %s370_s0 = inlined_call_operand.vmem [shape: f32[8,4], index: 0, kind: input, shape index: {}]   ;;  %s371_s1 = inlined_call_operand.hbm [shape: f32[134,128], index: 1, kind: input, shape index: {}]   ;;  %s372_s2 = inlined_call_operand.vmem [shape: f32[8,2], index: 2, kind: output, shape index: {0}]   ;;  %s373_s3 = inlined_call_operand.vmem [shape: s32[8,1], index: 3, kind: output, shape index: {1}]  }
   0x1   :  { %s17_s13 = sshll.u32 %s319_s12, 4  ;;  %s295_s16 = scalar_lea.hbm %s371_s1, 2176  ;;  %s18_s13 = int_to_ptr.vmem [resolvable:$true] %s17_s13 }
   0x2   :  { %p296_p0 = scmp.ne.s32.totalorder %s371_s1, %s295_s16  ;;  %p299_p1 = scmp.lt.u32.totalorder %s295_s16, %s371_s1 }
   0x4   :  { %p301_p2 = pnand %p299_p1, %p296_p0 }
   0x6   :  { %304 = shalt.err (!%p301_p2)
}
   0x7   :  { %s305_s21 = scalar_lea.vmem %s18_s13, 2176  ;;  %p310_p4 = scmp.lt.s32.totalorder %s18_s13, %s18_s13 }
   0x8   :  { %p306_p3 = scmp.ne.s32.totalorder %s18_s13, %s305_s21  ;;  %p311_p5 = scmp.lt.s32.totalorder %s305_s21, %s305_s21 }
   0xa   :  { %p312_p6 = por %p311_p5, %p310_p4 }
   0xc   :  { %p313_p7 = pnand %p312_p6, %p306_p3 }
   0xe   :  { %316 = shalt.err (!%p313_p7)
}
   0xf   :  { %s320_s22 = smov 128   ;;  %s321_s23 = smov 8  }
  0x10   :  { %23 = dma.hbm_to_vmem [thread:$0]  %s371_s1, 2176, %s18_s13, [#allocation3], %s320_s22, %s320_s22, %s321_s23  }
  0x11   :  { %317 = dma.done.wait [#allocation3], 2176  }
  0x12   :  { %318 = vsyncadd [#allocation3], 4294965120  ;;  %v322_v0 = vmov 0   ;;  %v323_v1 = vmov 2   ;;  %v324_v2 = vmov 0.0|0.0   ;;  %v27_v3 = vld [vmem:[%s370_s0] sm:$0xff]  ;;  %v172_v49 = vlaneseq }
  0x13   :  { %290 = vset.pattern.permute.xlu0 %v322_v0  ;;  %292 = vset.pattern.permute.xlu1 %v323_v1  ;;  %v79_v4 = vld [vmem:[#allocation2] sm:$0xff]  ;;  %v80_v5 = vld [vmem:[#allocation2 + $0x8] sm:$0xff]  ;;  %v81_v7 = vld [vmem:[#allocation2 + $0x10] sm:$0xff]  ;;  %v325_v12 = vmov 1   ;;  %v326_v13 = vmov 3   ;;  %vm327_vm0 = vmmov 0  }
  0x14   :  { %254 = vmatprep.subr.bf16.mxu0 %v324_v2  ;;  %31 = vperm.xlu0 %290, %v27_v3   ;;  %v255_v6 = vpack.c.bf16 %v80_v5, %v79_v4  ;;  %v82_v8 = vld [vmem:[#allocation2 + $0x18] sm:$0xff]  ;;  %v83_v10 = vld [vmem:[#allocation2 + $0x20] sm:$0xff]  ;;  %v84_v11 = vld [vmem:[#allocation2 + $0x28] sm:$0xff]  ;;  %v328_v21 = vmov 0.0   ;;  %v173_v50 = vand.u32 127, %v172_v49  ;;  %vm170_vm1 = vcmask 15360  }
  0x15   :  { %58 = vperm.xlu1 %292, %v27_v3   ;;  %v258_v9 = vpack.c.bf16 %v82_v8, %v81_v7  ;;  %v261_v14 = vpack.c.bf16 %v84_v11, %v83_v10  ;;  %v85_v15 = vld [vmem:[#allocation2 + $0x30] sm:$0xff]  ;;  %v86_v16 = vld [vmem:[#allocation2 + $0x38] sm:$0xff]  ;;  %v87_v18 = vld [vmem:[#allocation2 + $0x40] sm:$0xff]  ;;  %251 = vmatprep.mubr.msk.f32.mxu0 %vm327_vm0, %v328_v21  ;;  %vm185_vm5 = vcmask 7168  }
  0x16   :  { %256 = vmatpush3.bf16.msra.mxu0 %v255_v6  ;;  %v264_v17 = vpack.c.bf16 %v86_v16, %v85_v15  ;;  %v88_v19 = vld [vmem:[#allocation2 + $0x48] sm:$0xff]  ;;  %v89_v22 = vld [vmem:[#allocation2 + $0x50] sm:$0xff]  ;;  %v90_v23 = vld [vmem:[#allocation2 + $0x58] sm:$0xff]  ;;  %vm174_vm2 = vcmp.lt.s32.totalorder %v173_v50, 2  ;;  %v180_v56 = vcvt.s32.f32 %v173_v50 }
  0x17   :  { %257 = vmatprep.subr.bf16.mxu0 %v324_v2  ;;  %v267_v20 = vpack.c.bf16 %v88_v19, %v87_v18  ;;  %v270_v24 = vpack.c.bf16 %v90_v23, %v89_v22  ;;  %v91_v25 = vld [vmem:[#allocation2 + $0x60] sm:$0xff]  ;;  %v92_v26 = vld [vmem:[#allocation2 + $0x68] sm:$0xff]  ;;  %v93_v28 = vld [vmem:[#allocation2 + $0x70] sm:$0xff] }
  0x18   :  { %291 = vset.pattern.permute.xlu0 %v325_v12  ;;  %v273_v27 = vpack.c.bf16 %v92_v26, %v91_v25  ;;  %v94_v29 = vld [vmem:[#allocation2 + $0x78] sm:$0xff]  ;;  %v196_v31 = vld [vmem:[#allocation2 + $0x81] ss:$0 sm:$0xff]  ;;  %v197_v35 = vld [vmem:[#allocation2 + $0x85] ss:$0 sm:$0xff] }
  0x19   :  { %293 = vset.pattern.permute.xlu1 %v326_v13  ;;  %47 = vperm.xlu0 %291, %v27_v3   ;;  %v276_v30 = vpack.c.bf16 %v94_v29, %v93_v28  ;;  %v198_v36 = vld [vmem:[#allocation2 + $0x82] ss:$0 sm:$0xff]  ;;  %v199_v37 = vld [vmem:[#allocation2 + $0x83] ss:$0 sm:$0xff]  ;;  %v200_v39 = vld [vmem:[#allocation2 + $0x84] ss:$0 sm:$0xff] }
  0x1a   :  { %69 = vperm.xlu1 %293, %v27_v3   ;;  %259 = vmatpush3.bf16.msra.mxu0 %v258_v9  ;;  %v201_v51 = vld [vmem:[#allocation2 + $0x80] ss:$0 sm:$0xff] }
  0x1b   :  { %260 = vmatprep.subr.bf16.mxu0 %v324_v2 }
  0x1d   :  { %294 = vset.pattern.permute.xlu0 %v326_v13 }
  0x1e   :  { %262 = vmatpush3.bf16.msra.mxu0 %v261_v14 }
  0x1f   :  { %263 = vmatprep.subr.bf16.mxu0 %v324_v2 }
  0x22   :  { %265 = vmatpush3.bf16.msra.mxu0 %v264_v17 }
  0x23   :  { %266 = vmatprep.subr.bf16.mxu0 %v324_v2 }
  0x26   :  { %268 = vmatpush3.bf16.msra.mxu0 %v267_v20 }
  0x27   :  { %269 = vmatprep.subr.bf16.mxu0 %v324_v2 }
  0x2a   :  { %271 = vmatpush3.bf16.msra.mxu0 %v270_v24 }
  0x2b   :  { %272 = vmatprep.subr.bf16.mxu0 %v324_v2 }
  0x2e   :  { %274 = vmatpush3.bf16.msra.mxu0 %v273_v27 }
  0x2f   :  { %275 = vmatprep.subr.bf16.mxu0 %v324_v2 }
  0x32   :  { %277 = vmatpush3.bf16.msra.mxu0 %v276_v30 }
  0x93   :  { %v32_v32 = vpop.permute.xlu0 %31 }
  0x94   :  { %v59_v33 = vpop.permute.xlu1 %58  ;;  %v38_v34 = vmul.f32 %v196_v31, %v32_v32 }
  0x95   :  { %v65_v43 = vmul.f32 %v199_v37, %v59_v33 }
  0x96   :  { %v44_v41 = vadd.f32 %v197_v35, %v38_v34 }
  0x98   :  { %v48_v38 = vpop.permute.xlu0 %47 }
  0x99   :  { %v70_v40 = vpop.permute.xlu1 %69  ;;  %v54_v42 = vmul.f32 %v198_v36, %v48_v38 }
  0x9a   :  { %v76_v45 = vmul.f32 %v200_v39, %v70_v40 }
  0x9b   :  { %v55_v44 = vadd.f32 %v54_v42, %v44_v41 }
  0x9d   :  { %v66_v46 = vadd.f32 %v65_v43, %v55_v44 }
  0x9f   :  { %v77_v47 = vadd.f32 %v76_v45, %v66_v46 }
  0xa1   :  { %v78_v48 = vmax.f32 %v77_v47, 0.0 }
  0xa3   :  { %252 = vmatmul.mubr.f32.vlgmr.msra.gmra.mrb[0].mxu0 %v78_v48 }
 0x176   :  { %v166_v52 = vpop.f32.mrb[0].mxu0 }
 0x177   :  { %v167_v53 = vadd.f32 %v201_v51, %v166_v52  ;;  %v253_v54 = vpop.f32.mrb[1].mxu0 }
 0x179   :  { %171 = vst.msk [vmem:[%s372_s2] sm:$0xff] %vm170_vm1, %v167_v53  ;;  %v175_v55 = vsel %vm174_vm2, %v167_v53, -inf }
 0x17a   :  { %176 = vmax.xlane.f32.xlu1 %v175_v55 }
 0x207   :  { %v177_v57 = vpop.xlane.xlu1 %176 }
 0x208   :  { %vm178_vm3 = vcmp.eq.f32.partialorder %v175_v55, %v177_v57 }
 0x209   :  { %vm179_vm4 = vmand %vm178_vm3, %vm174_vm2 }
 0x20a   :  { %v181_v58 = vsel %vm179_vm4, %v180_v56, 1e+09 }
 0x20b   :  { %182 = vmin.xlane.f32.xlu0 %v181_v58 }
 0x298   :  { %v183_v59 = vpop.xlane.xlu0 %182 }
 0x299   :  { %v278_v60 = vtrunc.f32 %v183_v59 }
 0x29b   :  { %v279_v61 = vcvt.f32.s32 %v278_v60 }
 0x29d   :  { %186 = vst.msk [vmem:[%s373_s3] sm:$0xff] %vm185_vm5, %v279_v61 }
 0x29e   :  { %195 = vsyncpa [#allocation3], 1 }

// kernel: tpu_custom_call.1
= control target key start
LH: loop header
LB: loop body
LE: loop exit
PB: predicated region body
PF: predicated region fallthrough
CT: control target
= control target key end

     0   :  { %9 = vsyncpa [#allocation3], 0  ;;  %s319_s12 = smov [#allocation2]   ;;  %s370_s0 = inlined_call_operand.vmem [shape: f32[8,4], index: 0, kind: input, shape index: {}]   ;;  %s371_s1 = inlined_call_operand.hbm [shape: f32[134,128], index: 1, kind: input, shape index: {}]   ;;  %s372_s2 = inlined_call_operand.vmem [shape: f32[8,2], index: 2, kind: output, shape index: {0}]   ;;  %s373_s3 = inlined_call_operand.vmem [shape: s32[8,1], index: 3, kind: output, shape index: {1}]  }
   0x1   :  { %s17_s13 = sshll.u32 %s319_s12, 4  ;;  %s295_s16 = scalar_lea.hbm %s371_s1, 2176  ;;  %s18_s13 = int_to_ptr.vmem [resolvable:$true] %s17_s13 }
   0x2   :  { %p296_p0 = scmp.ne.s32.totalorder %s371_s1, %s295_s16  ;;  %p299_p1 = scmp.lt.u32.totalorder %s295_s16, %s371_s1 }
   0x4   :  { %p301_p2 = pnand %p299_p1, %p296_p0 }
   0x6   :  { %304 = shalt.err (!%p301_p2)
}
   0x7   :  { %s305_s21 = scalar_lea.vmem %s18_s13, 2176  ;;  %p310_p4 = scmp.lt.s32.totalorder %s18_s13, %s18_s13 }
   0x8   :  { %p306_p3 = scmp.ne.s32.totalorder %s18_s13, %s305_s21  ;;  %p311_p5 = scmp.lt.s32.totalorder %s305_s21, %s305_s21 }
   0xa   :  { %p312_p6 = por %p311_p5, %p310_p4 }
   0xc   :  { %p313_p7 = pnand %p312_p6, %p306_p3 }
   0xe   :  { %316 = shalt.err (!%p313_p7)
}
   0xf   :  { %s320_s22 = smov 128   ;;  %s321_s23 = smov 8  }
  0x10   :  { %23 = dma.hbm_to_vmem [thread:$0]  %s371_s1, 2176, %s18_s13, [#allocation3], %s320_s22, %s320_s22, %s321_s23  }
  0x11   :  { %317 = dma.done.wait [#allocation3], 2176  }
  0x12   :  { %318 = vsyncadd [#allocation3], 4294965120  ;;  %v322_v0 = vmov 0   ;;  %v323_v1 = vmov 2   ;;  %v324_v2 = vmov 0.0|0.0   ;;  %v27_v3 = vld [vmem:[%s370_s0] sm:$0xff]  ;;  %v172_v49 = vlaneseq }
  0x13   :  { %290 = vset.pattern.permute.xlu0 %v322_v0  ;;  %292 = vset.pattern.permute.xlu1 %v323_v1  ;;  %v79_v4 = vld [vmem:[#allocation2] sm:$0xff]  ;;  %v80_v5 = vld [vmem:[#allocation2 + $0x8] sm:$0xff]  ;;  %v81_v7 = vld [vmem:[#allocation2 + $0x10] sm:$0xff]  ;;  %v325_v12 = vmov 1   ;;  %v326_v13 = vmov 3   ;;  %vm327_vm0 = vmmov 0  }
  0x14   :  { %254 = vmatprep.subr.bf16.mxu0 %v324_v2  ;;  %31 = vperm.xlu0 %290, %v27_v3   ;;  %v255_v6 = vpack.c.bf16 %v80_v5, %v79_v4  ;;  %v82_v8 = vld [vmem:[#allocation2 + $0x18] sm:$0xff]  ;;  %v83_v10 = vld [vmem:[#allocation2 + $0x20] sm:$0xff]  ;;  %v84_v11 = vld [vmem:[#allocation2 + $0x28] sm:$0xff]  ;;  %v328_v21 = vmov 0.0   ;;  %v173_v50 = vand.u32 127, %v172_v49  ;;  %vm170_vm1 = vcmask 15360  }
  0x15   :  { %58 = vperm.xlu1 %292, %v27_v3   ;;  %v258_v9 = vpack.c.bf16 %v82_v8, %v81_v7  ;;  %v261_v14 = vpack.c.bf16 %v84_v11, %v83_v10  ;;  %v85_v15 = vld [vmem:[#allocation2 + $0x30] sm:$0xff]  ;;  %v86_v16 = vld [vmem:[#allocation2 + $0x38] sm:$0xff]  ;;  %v87_v18 = vld [vmem:[#allocation2 + $0x40] sm:$0xff]  ;;  %251 = vmatprep.mubr.msk.f32.mxu0 %vm327_vm0, %v328_v21  ;;  %vm185_vm5 = vcmask 7168  }
  0x16   :  { %256 = vmatpush3.bf16.msra.mxu0 %v255_v6  ;;  %v264_v17 = vpack.c.bf16 %v86_v16, %v85_v15  ;;  %v88_v19 = vld [vmem:[#allocation2 + $0x48] sm:$0xff]  ;;  %v89_v22 = vld [vmem:[#allocation2 + $0x50] sm:$0xff]  ;;  %v90_v23 = vld [vmem:[#allocation2 + $0x58] sm:$0xff]  ;;  %vm174_vm2 = vcmp.lt.s32.totalorder %v173_v50, 2  ;;  %v180_v56 = vcvt.s32.f32 %v173_v50 }
  0x17   :  { %257 = vmatprep.subr.bf16.mxu0 %v324_v2  ;;  %v267_v20 = vpack.c.bf16 %v88_v19, %v87_v18  ;;  %v270_v24 = vpack.c.bf16 %v90_v23, %v89_v22  ;;  %v91_v25 = vld [vmem:[#allocation2 + $0x60] sm:$0xff]  ;;  %v92_v26 = vld [vmem:[#allocation2 + $0x68] sm:$0xff]  ;;  %v93_v28 = vld [vmem:[#allocation2 + $0x70] sm:$0xff] }
  0x18   :  { %291 = vset.pattern.permute.xlu0 %v325_v12  ;;  %v273_v27 = vpack.c.bf16 %v92_v26, %v91_v25  ;;  %v94_v29 = vld [vmem:[#allocation2 + $0x78] sm:$0xff]  ;;  %v196_v31 = vld [vmem:[#allocation2 + $0x81] ss:$0 sm:$0xff]  ;;  %v197_v35 = vld [vmem:[#allocation2 + $0x85] ss:$0 sm:$0xff] }
  0x19   :  { %293 = vset.pattern.permute.xlu1 %v326_v13  ;;  %47 = vperm.xlu0 %291, %v27_v3   ;;  %v276_v30 = vpack.c.bf16 %v94_v29, %v93_v28  ;;  %v198_v36 = vld [vmem:[#allocation2 + $0x82] ss:$0 sm:$0xff]  ;;  %v199_v37 = vld [vmem:[#allocation2 + $0x83] ss:$0 sm:$0xff]  ;;  %v200_v39 = vld [vmem:[#allocation2 + $0x84] ss:$0 sm:$0xff] }
  0x1a   :  { %69 = vperm.xlu1 %293, %v27_v3   ;;  %259 = vmatpush3.bf16.msra.mxu0 %v258_v9  ;;  %v201_v51 = vld [vmem:[#allocation2 + $0x80] ss:$0 sm:$0xff] }
  0x1b   :  { %260 = vmatprep.subr.bf16.mxu0 %v324_v2 }
  0x1d   :  { %294 = vset.pattern.permute.xlu0 %v326_v13 }
  0x1e   :  { %262 = vmatpush3.bf16.msra.mxu0 %v261_v14 }
  0x1f   :  { %263 = vmatprep.subr.bf16.mxu0 %v324_v2 }
  0x22   :  { %265 = vmatpush3.bf16.msra.mxu0 %v264_v17 }
  0x23   :  { %266 = vmatprep.subr.bf16.mxu0 %v324_v2 }
  0x26   :  { %268 = vmatpush3.bf16.msra.mxu0 %v267_v20 }
  0x27   :  { %269 = vmatprep.subr.bf16.mxu0 %v324_v2 }
  0x2a   :  { %271 = vmatpush3.bf16.msra.mxu0 %v270_v24 }
  0x2b   :  { %272 = vmatprep.subr.bf16.mxu0 %v324_v2 }
  0x2e   :  { %274 = vmatpush3.bf16.msra.mxu0 %v273_v27 }
  0x2f   :  { %275 = vmatprep.subr.bf16.mxu0 %v324_v2 }
  0x32   :  { %277 = vmatpush3.bf16.msra.mxu0 %v276_v30 }
  0x93   :  { %v32_v32 = vpop.permute.xlu0 %31 }
  0x94   :  { %v59_v33 = vpop.permute.xlu1 %58  ;;  %v38_v34 = vmul.f32 %v196_v31, %v32_v32 }
  0x95   :  { %v65_v43 = vmul.f32 %v199_v37, %v59_v33 }
  0x96   :  { %v44_v41 = vadd.f32 %v197_v35, %v38_v34 }
  0x98   :  { %v48_v38 = vpop.permute.xlu0 %47 }
  0x99   :  { %v70_v40 = vpop.permute.xlu1 %69  ;;  %v54_v42 = vmul.f32 %v198_v36, %v48_v38 }
  0x9a   :  { %v76_v45 = vmul.f32 %v200_v39, %v70_v40 }
  0x9b   :  { %v55_v44 = vadd.f32 %v54_v42, %v44_v41 }
  0x9d   :  { %v66_v46 = vadd.f32 %v65_v43, %v55_v44 }
  0x9f   :  { %v77_v47 = vadd.f32 %v76_v45, %v66_v46 }
  0xa1   :  { %v78_v48 = vmax.f32 %v77_v47, 0.0 }
  0xa3   :  { %252 = vmatmul.mubr.f32.vlgmr.msra.gmra.mrb[0].mxu0 %v78_v48 }
 0x176   :  { %v166_v52 = vpop.f32.mrb[0].mxu0 }
 0x177   :  { %v167_v53 = vadd.f32 %v201_v51, %v166_v52  ;;  %v253_v54 = vpop.f32.mrb[1].mxu0 }
 0x179   :  { %171 = vst.msk [vmem:[%s372_s2] sm:$0xff] %vm170_vm1, %v167_v53  ;;  %v175_v55 = vsel %vm174_vm2, %v167_v53, -inf }
 0x17a   :  { %176 = vmax.xlane.f32.xlu1 %v175_v55 }
 0x207   :  { %v177_v57 = vpop.xlane.xlu1 %176 }
 0x208   :  { %vm178_vm3 = vcmp.eq.f32.partialorder %v175_v55, %v177_v57 }
 0x209   :  { %vm179_vm4 = vmand %vm178_vm3, %vm174_vm2 }
 0x20a   :  { %v181_v58 = vsel %vm179_vm4, %v180_v56, 1e+09 }
 0x20b   :  { %182 = vmin.xlane.f32.xlu0 %v181_v58 }
 0x298   :  { %v183_v59 = vpop.xlane.xlu0 %182 }
 0x299   :  { %v278_v60 = vtrunc.f32 %v183_v59 }
 0x29b   :  { %v279_v61 = vcvt.f32.s32 %v278_v60 }
 0x29d   :  { %186 = vst.msk [vmem:[%s373_s3] sm:$0xff] %vm185_vm5, %v279_v61 }
 0x29e   :  { %195 = vsyncpa [#allocation3], 1 }

</bundles_post_ra>
